<compile_context>
chip_gen: v7x
topology: tpu7x:2x2x1
jax: 0.10.0
libtpu: 0.0.40
codegen_flags: <defaults>
</compile_context>

<pallas_src>
import functools

import numpy as np
import jax
import jax.numpy as jnp
from jax.experimental import pallas as pl
from jax.experimental.pallas import tpu as pltpu

# ----------------------------- config ---------------------------------------
STATE_DIM = 7        # state_dim in InvDynamics.__init__
EMBD_SIZE = 32       # synthetic stand-in for VC-1 embd_size (=768 for real VC-1)
PATCH = 8            # synthetic patch size
IMAGENET_MEAN = np.array([0.485, 0.456, 0.406], dtype=np.float32)
IMAGENET_STD = np.array([0.229, 0.224, 0.225], dtype=np.float32)
MXU_DTYPE = jnp.bfloat16           # MXU operand dtype (accumulation is f32)
VMEM_LIMIT_BYTES = 32 * 1024 * 1024  # comfortably under v7x's 64 MiB physical VMEM

# TODO(synk): model_transforms' Resize(256)/CenterCrop(224) and the pretrained
# VC-1 ViT-Base weights have no in-script equivalent; only the per-channel
# normalization (folded into the weights) + a synthetic patch-embed encoder
# are implemented.


def _round_up(n, m):
    return ((n + m - 1) // m) * m


# ----------------------------- Pallas kernel --------------------------------
def invdyn_kernel(patches_ref, wp_ref, wi_ref, bi_ref, out_ref):
    """Fused: mean-pool (leading patch axis) -> norm-folded patch embed
    -> inv_model linear (normalization bias folded into bi).

    patches_ref : [P, TB, Dp]  bf16  raw (un-normalized) patch pixels
    wp_ref      : [Dp, E_p]    bf16  invstd-folded patch-embedding weight
    wi_ref      : [E_p, S_p]   bf16  inv_model weight (transposed vs torch)
    bi_ref      : [1, S_p]     f32   (-(mean*invstd)@wp) @ wi + inv_model bias
    out_ref     : [TB, S_p]    f32
    """
    P, TB, DP = patches_ref.shape

    # Mean-pool over the LEADING patch axis: per-slice f32 accumulation on the
    # VPU.  No whole-block f32 upcast, no cross-sublane (XLU) reduce.
    # (P is small and static; the unrolled straight-line loop is ideal here.
    #  At real VC-1 P=196 prefer lax.fori_loop(..., unroll=True).)
    pooled = jnp.zeros((TB, DP), jnp.float32)
    for p in range(P):
        pooled = pooled + patches_ref[p].astype(jnp.float32)
    pooled = pooled * (1.0 / P)

    # Synthetic visual encoder: patch-embed matmul with the ImageNet
    # normalization folded into wp.  bf16 MXU operands, f32 accumulation.
    emb = jnp.dot(pooled.astype(wp_ref.dtype), wp_ref[...],
                  preferred_element_type=jnp.float32)

    # inv_model: Linear(embd_size, state_dim), lane-padded to S_p.
    out_ref[...] = jnp.dot(emb.astype(wi_ref.dtype), wi_ref[...],
                           preferred_element_type=jnp.float32) + bi_ref[...]


# ----------------------------- weight prep (hoisted) -------------------------
def make_params(key, dp, embd_size=EMBD_SIZE, state_dim=STATE_DIM):
    k1, k2, k3 = jax.random.split(key, 3)
    wp = jax.random.normal(k1, (dp, embd_size), jnp.float32) * 0.02
    wi = jax.random.normal(k2, (embd_size, state_dim), jnp.float32) * 0.02
    bi = jax.random.normal(k3, (1, state_dim), jnp.float32) * 0.01
    return wp, wi, bi


def prepare_weights(wp, wi, bi, channels=3, ph=PATCH, pw=PATCH):
    """Fold ImageNet normalization into the weights, fuse the normalization
    bias into the final bias, lane-pad (E,S -> 128) and cast to bf16.

    Weights are constant: call ONCE and cache the result (hoisted out of the
    per-call forward path)."""
    Dp, E = wp.shape
    S = wi.shape[1]
    assert Dp == channels * ph * pw

    mean_vec = jnp.broadcast_to(
        jnp.asarray(IMAGENET_MEAN)[:, None, None], (channels, ph, pw)).reshape(Dp)
    invstd_vec = jnp.broadcast_to(
        1.0 / jnp.asarray(IMAGENET_STD)[:, None, None],
        (channels, ph, pw)).reshape(Dp)

    wp_norm = invstd_vec[:, None] * wp                 # [Dp, E]  exact affine fold
    bn = -(mean_vec * invstd_vec) @ wp                 # [E]      normalization bias
    # bn only feeds a linear layer in this (linear) stand-in encoder, so it
    # folds exactly into the final bias.  Would NOT carry to the real VC-1 ViT.
    bi_fused = bn @ wi + bi.reshape(S)                 # [S]

    E_p = _round_up(E, 128)
    S_p = _round_up(S, 128)
    # NOTE: Dp is deliberately NOT padded -- the streamed patches keep their
    # true last dim and wp keeps matching rows (full-extent block dims).
    wp_p = jnp.pad(wp_norm, ((0, 0), (0, E_p - E))).astype(MXU_DTYPE)
    wi_p = jnp.pad(wi, ((0, E_p - E), (0, S_p - S))).astype(MXU_DTYPE)
    bi_p = jnp.pad(bi_fused[None, :], ((0, 0), (0, S_p - S)))   # f32
    return wp_p, wi_p, bi_p


# ----------------------------- glue -----------------------------------------
def obs_to_patches(obs, ph=PATCH, pw=PATCH):
    """NCHW image -> [P, B, C*ph*pw] patches with the PATCH axis leading
    (so the kernel pools over a leading axis).  Flatten order is (C, ph, pw)."""
    B, C, H, W = obs.shape
    nph, npw = H // ph, W // pw
    x = obs.reshape(B, C, nph, ph, npw, pw)
    x = jnp.transpose(x, (2, 4, 0, 1, 3, 5))          # [nph, npw, B, C, ph, pw]
    return x.reshape(nph * npw, B, C * ph * pw)


def _choose_tb(B, P, Dp, tb_target, vmem_budget=VMEM_LIMIT_BYTES // 2):
    """Batch tile: >=16 (bf16 sublane pack), multiple of 16, capped so the
    double-buffered patch stream fits the VMEM budget (tightest on v7x's
    64 MiB at real VC-1 shapes P=196, Dp=768)."""
    bytes_per_row = 2 * P * Dp * 2                    # double-buffer, bf16
    cap = max(16, (vmem_budget // bytes_per_row) // 16 * 16)
    return int(min(tb_target, cap, _round_up(B, 16)))


@functools.partial(jax.jit, static_argnames=("ph", "pw", "tb", "state_dim"))
def inv_dynamics_forward(obs, wp_p, wi_p, bi_p, ph=PATCH, pw=PATCH,
                         tb=128, state_dim=STATE_DIM):
    B = obs.shape[0]
    # Cast to bf16 BEFORE the big patch-extraction transpose: halves the bytes
    # moved by the wrapper glue.  Pixels are therefore bf16-rounded before
    # pooling; the pooling itself accumulates in f32 inside the kernel.
    patches = obs_to_patches(obs.astype(MXU_DTYPE), ph, pw)   # [P, B, Dp] bf16
    P, _, Dp = patches.shape
    E_p = wp_p.shape[1]
    S_p = wi_p.shape[1]

    tb = _choose_tb(B, P, Dp, tb)
    B_p = _round_up(B, tb)
    # Pad only the batch axis (padded rows produce bias-only garbage that is
    # sliced away below).  No Dp zero-pad of the dominant streamed operand.
    patches_p = jnp.pad(patches, ((0, 0), (0, B_p - B), (0, 0)))

    # NOTE: at real batch sizes keep B_p // tb >= 2 so ("parallel",) can shard
    # the grid across v7x's two TensorCores.
    grid = (B_p // tb,)

    cost = pl.CostEstimate(
        flops=B_p * P * Dp + 2 * B_p * Dp * E_p + 2 * B_p * E_p * S_p,
        transcendentals=0,
        bytes_accessed=(patches_p.size * 2 + wp_p.size * 2 + wi_p.size * 2
                        + bi_p.size * 4 + B_p * S_p * 4),
    )

    out_pad = pl.pallas_call(
        invdyn_kernel,
        out_shape=jax.ShapeDtypeStruct((B_p, S_p), jnp.float32),
        grid=grid,
        in_specs=[
            # streamed patches; last dim kept at the TRUE Dp (full-extent block)
            pl.BlockSpec((P, tb, Dp), lambda b: (0, b, 0)),
            pl.BlockSpec((Dp, E_p), lambda b: (0, 0)),     # resident weight
            pl.BlockSpec((E_p, S_p), lambda b: (0, 0)),    # resident weight
            pl.BlockSpec((1, S_p), lambda b: (0, 0)),      # fused bias
        ],
        out_specs=pl.BlockSpec((tb, S_p), lambda b: (b, 0)),
        compiler_params=pltpu.CompilerParams(
            dimension_semantics=("parallel",),
            vmem_limit_bytes=VMEM_LIMIT_BYTES),
        cost_estimate=cost,
    )(patches_p, wp_p, wi_p, bi_p)

    return out_pad[:B, :state_dim]


# ----------------------------- reference -------------------------------------
def inv_dynamics_reference(obs, wp, wi, bi, ph=PATCH, pw=PATCH):
    """Pure-JAX f32 reference with the original (un-folded, un-fused) order:
    normalize -> per-patch linear embed -> mean-pool -> inv_model linear."""
    B, C, H, W = obs.shape
    patches = jnp.transpose(obs_to_patches(obs, ph, pw), (1, 0, 2))  # [B, P, Dp]
    Dp = patches.shape[-1]
    mean_vec = jnp.broadcast_to(
        jnp.asarray(IMAGENET_MEAN)[:, None, None], (C, ph, pw)).reshape(1, 1, Dp)
    invstd_vec = jnp.broadcast_to(
        1.0 / jnp.asarray(IMAGENET_STD)[:, None, None],
        (C, ph, pw)).reshape(1, 1, Dp)
    x = (patches - mean_vec) * invstd_vec
    emb = jnp.einsum('bpd,de->bpe', x, wp)
    pooled = jnp.mean(emb, axis=1)
    return pooled @ wi + bi


# ----------------------------- main ------------------------------------------
if __name__ == "__main__":
    key = jax.random.PRNGKey(0)
    k_obs, k_par = jax.random.split(key)

    B, C, H, W = 2, 3, 32, 32                 # small NCHW image batch
    obs = jax.random.uniform(k_obs, (B, C, H, W), jnp.float32)  # pixels in [0,1]

    Dp = C * PATCH * PATCH
    wp, wi, bi = make_params(k_par, Dp)

    # Weight-side prep (norm fold, bias fuse, pad, bf16 cast) done ONCE,
    # outside the per-call forward path.
    wp_p, wi_p, bi_p = prepare_weights(wp, wi, bi, channels=C)

    out = inv_dynamics_forward(obs, wp_p, wi_p, bi_p)
    out = jax.block_until_ready(out)

    ref = inv_dynamics_reference(obs, wp, wi, bi)
    # bf16 MXU operands / bf16 pixel rounding (f32 accumulation) -> relaxed
    # tolerances vs the pure-f32 reference.
    np.testing.assert_allclose(np.asarray(out), np.asarray(ref),
                               rtol=5e-2, atol=5e-3)
    assert out.shape == (B, STATE_DIM)
    print("KERNEL_OK")
</pallas_src>

<mosaic_0001>
module attributes {stable_mosaic.version = 11 : i64} {
  func.func @invdyn_kernel(%arg0: i32, %arg1: memref<16x16x192xbf16, #tpu.memory_space<vmem>>, %arg2: memref<192x128xbf16, #tpu.memory_space<vmem>>, %arg3: memref<128x128xbf16, #tpu.memory_space<vmem>>, %arg4: memref<1x128xf32, #tpu.memory_space<vmem>>, %arg5: memref<16x128xf32, #tpu.memory_space<vmem>>) attributes {dimension_semantics = [#tpu.dimension_semantics<parallel>], iteration_bounds = array<i64: 1>, scalar_prefetch = 0 : i64, scratch_operands = 0 : i64, tpu.core_type = #tpu.core_type<tc>, window_params = [{transform_indices = @transform_0, window_bounds = array<i64: 16, 16, 192>}, {pipeline_mode = #tpu.pipeline_mode<synchronous>, transform_indices = @transform_1, window_bounds = array<i64: 192, 128>}, {pipeline_mode = #tpu.pipeline_mode<synchronous>, transform_indices = @transform_2, window_bounds = array<i64: 128, 128>}, {pipeline_mode = #tpu.pipeline_mode<synchronous>, transform_indices = @transform_3, window_bounds = array<i64: 1, 128>}, {transform_indices = @transform_4, window_bounds = array<i64: 16, 128>}]} {
    %cst = arith.constant 0.000000e+00 : f32
    %0 = vector.broadcast %cst : f32 to vector<16x192xf32>
    %c0 = arith.constant 0 : index
    %c0_0 = arith.constant 0 : index
    %c0_1 = arith.constant 0 : index
    %1 = vector.load %arg1[%c0, %c0_0, %c0_1] : memref<16x16x192xbf16, #tpu.memory_space<vmem>>, vector<1x16x192xbf16>
    %2 = vector.shape_cast %1 : vector<1x16x192xbf16> to vector<16x192xbf16>
    %3 = arith.extf %2 : vector<16x192xbf16> to vector<16x192xf32>
    %4 = arith.addf %0, %3 : vector<16x192xf32>
    %c1 = arith.constant 1 : index
    %c0_2 = arith.constant 0 : index
    %c0_3 = arith.constant 0 : index
    %5 = vector.load %arg1[%c1, %c0_2, %c0_3] : memref<16x16x192xbf16, #tpu.memory_space<vmem>>, vector<1x16x192xbf16>
    %6 = vector.shape_cast %5 : vector<1x16x192xbf16> to vector<16x192xbf16>
    %7 = arith.extf %6 : vector<16x192xbf16> to vector<16x192xf32>
    %8 = arith.addf %4, %7 : vector<16x192xf32>
    %c2 = arith.constant 2 : index
    %c0_4 = arith.constant 0 : index
    %c0_5 = arith.constant 0 : index
    %9 = vector.load %arg1[%c2, %c0_4, %c0_5] : memref<16x16x192xbf16, #tpu.memory_space<vmem>>, vector<1x16x192xbf16>
    %10 = vector.shape_cast %9 : vector<1x16x192xbf16> to vector<16x192xbf16>
    %11 = arith.extf %10 : vector<16x192xbf16> to vector<16x192xf32>
    %12 = arith.addf %8, %11 : vector<16x192xf32>
    %c3 = arith.constant 3 : index
    %c0_6 = arith.constant 0 : index
    %c0_7 = arith.constant 0 : index
    %13 = vector.load %arg1[%c3, %c0_6, %c0_7] : memref<16x16x192xbf16, #tpu.memory_space<vmem>>, vector<1x16x192xbf16>
    %14 = vector.shape_cast %13 : vector<1x16x192xbf16> to vector<16x192xbf16>
    %15 = arith.extf %14 : vector<16x192xbf16> to vector<16x192xf32>
    %16 = arith.addf %12, %15 : vector<16x192xf32>
    %c4 = arith.constant 4 : index
    %c0_8 = arith.constant 0 : index
    %c0_9 = arith.constant 0 : index
    %17 = vector.load %arg1[%c4, %c0_8, %c0_9] : memref<16x16x192xbf16, #tpu.memory_space<vmem>>, vector<1x16x192xbf16>
    %18 = vector.shape_cast %17 : vector<1x16x192xbf16> to vector<16x192xbf16>
    %19 = arith.extf %18 : vector<16x192xbf16> to vector<16x192xf32>
    %20 = arith.addf %16, %19 : vector<16x192xf32>
    %c5 = arith.constant 5 : index
    %c0_10 = arith.constant 0 : index
    %c0_11 = arith.constant 0 : index
    %21 = vector.load %arg1[%c5, %c0_10, %c0_11] : memref<16x16x192xbf16, #tpu.memory_space<vmem>>, vector<1x16x192xbf16>
    %22 = vector.shape_cast %21 : vector<1x16x192xbf16> to vector<16x192xbf16>
    %23 = arith.extf %22 : vector<16x192xbf16> to vector<16x192xf32>
    %24 = arith.addf %20, %23 : vector<16x192xf32>
    %c6 = arith.constant 6 : index
    %c0_12 = arith.constant 0 : index
    %c0_13 = arith.constant 0 : index
    %25 = vector.load %arg1[%c6, %c0_12, %c0_13] : memref<16x16x192xbf16, #tpu.memory_space<vmem>>, vector<1x16x192xbf16>
    %26 = vector.shape_cast %25 : vector<1x16x192xbf16> to vector<16x192xbf16>
    %27 = arith.extf %26 : vector<16x192xbf16> to vector<16x192xf32>
    %28 = arith.addf %24, %27 : vector<16x192xf32>
    %c7 = arith.constant 7 : index
    %c0_14 = arith.constant 0 : index
    %c0_15 = arith.constant 0 : index
    %29 = vector.load %arg1[%c7, %c0_14, %c0_15] : memref<16x16x192xbf16, #tpu.memory_space<vmem>>, vector<1x16x192xbf16>
    %30 = vector.shape_cast %29 : vector<1x16x192xbf16> to vector<16x192xbf16>
    %31 = arith.extf %30 : vector<16x192xbf16> to vector<16x192xf32>
    %32 = arith.addf %28, %31 : vector<16x192xf32>
    %c8 = arith.constant 8 : index
    %c0_16 = arith.constant 0 : index
    %c0_17 = arith.constant 0 : index
    %33 = vector.load %arg1[%c8, %c0_16, %c0_17] : memref<16x16x192xbf16, #tpu.memory_space<vmem>>, vector<1x16x192xbf16>
    %34 = vector.shape_cast %33 : vector<1x16x192xbf16> to vector<16x192xbf16>
    %35 = arith.extf %34 : vector<16x192xbf16> to vector<16x192xf32>
    %36 = arith.addf %32, %35 : vector<16x192xf32>
    %c9 = arith.constant 9 : index
    %c0_18 = arith.constant 0 : index
    %c0_19 = arith.constant 0 : index
    %37 = vector.load %arg1[%c9, %c0_18, %c0_19] : memref<16x16x192xbf16, #tpu.memory_space<vmem>>, vector<1x16x192xbf16>
    %38 = vector.shape_cast %37 : vector<1x16x192xbf16> to vector<16x192xbf16>
    %39 = arith.extf %38 : vector<16x192xbf16> to vector<16x192xf32>
    %40 = arith.addf %36, %39 : vector<16x192xf32>
    %c10 = arith.constant 10 : index
    %c0_20 = arith.constant 0 : index
    %c0_21 = arith.constant 0 : index
    %41 = vector.load %arg1[%c10, %c0_20, %c0_21] : memref<16x16x192xbf16, #tpu.memory_space<vmem>>, vector<1x16x192xbf16>
    %42 = vector.shape_cast %41 : vector<1x16x192xbf16> to vector<16x192xbf16>
    %43 = arith.extf %42 : vector<16x192xbf16> to vector<16x192xf32>
    %44 = arith.addf %40, %43 : vector<16x192xf32>
    %c11 = arith.constant 11 : index
    %c0_22 = arith.constant 0 : index
    %c0_23 = arith.constant 0 : index
    %45 = vector.load %arg1[%c11, %c0_22, %c0_23] : memref<16x16x192xbf16, #tpu.memory_space<vmem>>, vector<1x16x192xbf16>
    %46 = vector.shape_cast %45 : vector<1x16x192xbf16> to vector<16x192xbf16>
    %47 = arith.extf %46 : vector<16x192xbf16> to vector<16x192xf32>
    %48 = arith.addf %44, %47 : vector<16x192xf32>
    %c12 = arith.constant 12 : index
    %c0_24 = arith.constant 0 : index
    %c0_25 = arith.constant 0 : index
    %49 = vector.load %arg1[%c12, %c0_24, %c0_25] : memref<16x16x192xbf16, #tpu.memory_space<vmem>>, vector<1x16x192xbf16>
    %50 = vector.shape_cast %49 : vector<1x16x192xbf16> to vector<16x192xbf16>
    %51 = arith.extf %50 : vector<16x192xbf16> to vector<16x192xf32>
    %52 = arith.addf %48, %51 : vector<16x192xf32>
    %c13 = arith.constant 13 : index
    %c0_26 = arith.constant 0 : index
    %c0_27 = arith.constant 0 : index
    %53 = vector.load %arg1[%c13, %c0_26, %c0_27] : memref<16x16x192xbf16, #tpu.memory_space<vmem>>, vector<1x16x192xbf16>
    %54 = vector.shape_cast %53 : vector<1x16x192xbf16> to vector<16x192xbf16>
    %55 = arith.extf %54 : vector<16x192xbf16> to vector<16x192xf32>
    %56 = arith.addf %52, %55 : vector<16x192xf32>
    %c14 = arith.constant 14 : index
    %c0_28 = arith.constant 0 : index
    %c0_29 = arith.constant 0 : index
    %57 = vector.load %arg1[%c14, %c0_28, %c0_29] : memref<16x16x192xbf16, #tpu.memory_space<vmem>>, vector<1x16x192xbf16>
    %58 = vector.shape_cast %57 : vector<1x16x192xbf16> to vector<16x192xbf16>
    %59 = arith.extf %58 : vector<16x192xbf16> to vector<16x192xf32>
    %60 = arith.addf %56, %59 : vector<16x192xf32>
    %c15 = arith.constant 15 : index
    %c0_30 = arith.constant 0 : index
    %c0_31 = arith.constant 0 : index
    %61 = vector.load %arg1[%c15, %c0_30, %c0_31] : memref<16x16x192xbf16, #tpu.memory_space<vmem>>, vector<1x16x192xbf16>
    %62 = vector.shape_cast %61 : vector<1x16x192xbf16> to vector<16x192xbf16>
    %63 = arith.extf %62 : vector<16x192xbf16> to vector<16x192xf32>
    %64 = arith.addf %60, %63 : vector<16x192xf32>
    %cst_32 = arith.constant 6.250000e-02 : f32
    %65 = vector.broadcast %cst_32 : f32 to vector<16x192xf32>
    %66 = arith.mulf %64, %65 : vector<16x192xf32>
    %67 = arith.truncf %66 : vector<16x192xf32> to vector<16x192xbf16>
    %c0_33 = arith.constant 0 : index
    %c0_34 = arith.constant 0 : index
    %68 = vector.load %arg2[%c0_33, %c0_34] : memref<192x128xbf16, #tpu.memory_space<vmem>>, vector<192x128xbf16>
    %cst_35 = arith.constant dense<0.000000e+00> : vector<16x128xf32>
    %69 = tpu.matmul %67, %68, %cst_35 {dimension_numbers = #tpu.dot_dimension_numbers<[1], [0], [0], [1], [0, 0, 1, 1], [], []>} : vector<16x192xbf16>, vector<192x128xbf16>, vector<16x128xf32> -> vector<16x128xf32>
    %70 = arith.truncf %69 : vector<16x128xf32> to vector<16x128xbf16>
    %c0_36 = arith.constant 0 : index
    %c0_37 = arith.constant 0 : index
    %71 = vector.load %arg3[%c0_36, %c0_37] : memref<128x128xbf16, #tpu.memory_space<vmem>>, vector<128x128xbf16>
    %cst_38 = arith.constant dense<0.000000e+00> : vector<16x128xf32>
    %72 = tpu.matmul %70, %71, %cst_38 {dimension_numbers = #tpu.dot_dimension_numbers<[1], [0], [0], [1], [0, 0, 1, 1], [], []>} : vector<16x128xbf16>, vector<128x128xbf16>, vector<16x128xf32> -> vector<16x128xf32>
    %c0_39 = arith.constant 0 : index
    %c0_40 = arith.constant 0 : index
    %73 = vector.load %arg4[%c0_39, %c0_40] : memref<1x128xf32, #tpu.memory_space<vmem>>, vector<1x128xf32>
    %74 = vector.broadcast %73 : vector<1x128xf32> to vector<16x128xf32>
    %75 = arith.addf %72, %74 : vector<16x128xf32>
    %c0_41 = arith.constant 0 : index
    %c0_42 = arith.constant 0 : index
    %76 = vector.load %arg5[%c0_41, %c0_42] : memref<16x128xf32, #tpu.memory_space<vmem>>, vector<16x128xf32>
    tpu.vector_store %arg5[%c0_41, %c0_42], %75 {strides = array<i32>} : memref<16x128xf32, #tpu.memory_space<vmem>>, vector<16x128xf32>,
    return
  }
  func.func @transform_0(%arg0: i32) -> (i32, i32, i32) {
    %c0_i32 = arith.constant 0 : i32
    %c0_i32_0 = arith.constant 0 : i32
    %c0_i32_1 = arith.constant 0 : i32
    return %c0_i32, %arg0, %c0_i32_0 : i32, i32, i32
  }
  func.func @transform_1(%arg0: i32) -> (i32, i32) {
    %c0_i32 = arith.constant 0 : i32
    %c0_i32_0 = arith.constant 0 : i32
    %c0_i32_1 = arith.constant 0 : i32
    return %c0_i32, %c0_i32_0 : i32, i32
  }
  func.func @transform_2(%arg0: i32) -> (i32, i32) {
    %c0_i32 = arith.constant 0 : i32
    %c0_i32_0 = arith.constant 0 : i32
    %c0_i32_1 = arith.constant 0 : i32
    return %c0_i32, %c0_i32_0 : i32, i32
  }
  func.func @transform_3(%arg0: i32) -> (i32, i32) {
    %c0_i32 = arith.constant 0 : i32
    %c0_i32_0 = arith.constant 0 : i32
    %c0_i32_1 = arith.constant 0 : i32
    return %c0_i32, %c0_i32_0 : i32, i32
  }
  func.func @transform_4(%arg0: i32) -> (i32, i32) {
    %c0_i32 = arith.constant 0 : i32
    %c0_i32_0 = arith.constant 0 : i32
    return %arg0, %c0_i32 : i32, i32
  }
}

</mosaic_0001>

<bundles_post_ra>
// kernel: inv_dynamics_forward.1
= control target key start
LH: loop header
LB: loop body
LE: loop exit
PB: predicated region body
PF: predicated region fallthrough
CT: control target
= control target key end

     0   :  { %v563_v0 = vmov 0   ;;  %v564_v2 = vmov 0.0   ;;  %vm295_vm0 = vcmask 523264   ;;  %vm565_vm1 = vmmov 0   ;;  %s905_s1 = inlined_call_operand.vmem [shape: bf16[192,128], index: 1, kind: input, shape index: {}]   ;;  %s906_s0 = inlined_call_operand.vmem [shape: bf16[16,16,192], index: 0, kind: input, shape index: {}]   ;;  %s907_s2 = inlined_call_operand.vmem [shape: bf16[128,128], index: 2, kind: input, shape index: {}]   ;;  %s908_s3 = inlined_call_operand.vmem [shape: f32[1,128], index: 3, kind: input, shape index: {}]   ;;  %s909_s4 = inlined_call_operand.vmem [shape: f32[16,128], index: 4, kind: output, shape index: {}]  }
   0x1   :  { %299 = vmatprep.subr.bf16.mxu0 %v563_v0  ;;  %v543_v1 = vld [vmem:[%s905_s1] sm:$0xff]   ;;  %520 = vmatprep.subr.bf16.mxu1 %v564_v2  ;;  %v544_v3 = vld [vmem:[%s905_s1 + $0x8] sm:$0xff]   ;;  %v545_v4 = vld [vmem:[%s905_s1 + $0x10] sm:$0xff]  }
   0x2   :  { %300 = vmatpush1.bf16.msra.mxu0 %v543_v1  ;;  %v546_v5 = vld [vmem:[%s905_s1 + $0x18] sm:$0xff]   ;;  %v611_v6 = vld [vmem:[%s906_s0] sm:$0xff]  ;;  %v616_v7 = vld [vmem:[%s906_s0 + $0x8] sm:$0xff]  ;;  %536 = vmatprep.mubr.msk.bf16.mxu1 %vm565_vm1, %v564_v2 }
   0x3   :  { %301 = vmatprep.subr.bf16.mxu0 %v563_v0  ;;  %v621_v8 = vld [vmem:[%s906_s0 + $0x10] sm:$0xff]  ;;  %v21_v9 = vunpack.c.h.bf16 %v611_v6  ;;  %v23_v10 = vunpack.c.h.bf16 %v616_v7  ;;  %v628_v11 = vld [vmem:[%s906_s0 + $0x18] sm:$0xff]  ;;  %v633_v12 = vld [vmem:[%s906_s0 + $0x20] sm:$0xff] }
   0x4   :  { %v638_v13 = vld [vmem:[%s906_s0 + $0x28] sm:$0xff]  ;;  %v547_v14 = vld [vmem:[%s905_s1 + $0x20] sm:$0xff]   ;;  %v32_v15 = vunpack.c.h.bf16 %v621_v8  ;;  %v34_v16 = vunpack.c.h.bf16 %v628_v11  ;;  %v648_v17 = vld [vmem:[%s906_s0 + $0x30] sm:$0xff]  ;;  %v43_v19 = vunpack.c.h.bf16 %v633_v12 }
   0x5   :  { %v653_v18 = vld [vmem:[%s906_s0 + $0x38] sm:$0xff]  ;;  %v45_v20 = vunpack.c.h.bf16 %v638_v13  ;;  %v661_v21 = vld [vmem:[%s906_s0 + $0x40] sm:$0xff]  ;;  %v666_v22 = vld [vmem:[%s906_s0 + $0x48] sm:$0xff]  ;;  %v54_v25 = vunpack.c.h.bf16 %v648_v17 }
   0x6   :  { %302 = vmatpush1.bf16.msra.mxu0 %v544_v3  ;;  %v36_v23 = vadd.f32 %v32_v15, %v21_v9  ;;  %v38_v24 = vadd.f32 %v34_v16, %v23_v10  ;;  %v56_v26 = vunpack.c.h.bf16 %v653_v18  ;;  %v673_v27 = vld [vmem:[%s906_s0 + $0x50] sm:$0xff]  ;;  %v678_v28 = vld [vmem:[%s906_s0 + $0x58] sm:$0xff]  ;;  %v548_v29 = vld [vmem:[%s905_s1 + $0x28] sm:$0xff]   ;;  %v65_v32 = vunpack.c.h.bf16 %v661_v21 }
   0x7   :  { %303 = vmatprep.subr.bf16.mxu0 %v563_v0  ;;  %v67_v33 = vunpack.c.h.bf16 %v666_v22  ;;  %v689_v34 = vld [vmem:[%s906_s0 + $0x60] sm:$0xff]  ;;  %v694_v35 = vld [vmem:[%s906_s0 + $0x68] sm:$0xff]  ;;  %v76_v38 = vunpack.c.h.bf16 %v673_v27  ;;  %v78_v39 = vunpack.c.h.bf16 %v678_v28  ;;  %v549_v40 = vld [vmem:[%s905_s1 + $0x30] sm:$0xff]   ;;  %v22_v15 = vunpack.c.l.bf16 %v616_v7 }
   0x8   :  { %v47_v30 = vadd.f32 %v43_v19, %v36_v23  ;;  %v49_v31 = vadd.f32 %v45_v20, %v38_v24  ;;  %v704_v41 = vld [vmem:[%s906_s0 + $0x70] sm:$0xff]  ;;  %v709_v42 = vld [vmem:[%s906_s0 + $0x78] sm:$0xff]  ;;  %v87_v45 = vunpack.c.h.bf16 %v689_v34  ;;  %v89_v46 = vunpack.c.h.bf16 %v694_v35  ;;  %v716_v47 = vld [vmem:[%s906_s0 + $0x80] sm:$0xff] }
   0x9   :  { %v721_v48 = vld [vmem:[%s906_s0 + $0x88] sm:$0xff]  ;;  %v727_v49 = vld [vmem:[%s906_s0 + $0x90] sm:$0xff]  ;;  %v555_v50 = vld [vmem:[%s907_s2] sm:$0xff]   ;;  %v98_v54 = vunpack.c.h.bf16 %v704_v41  ;;  %v100_v55 = vunpack.c.h.bf16 %v709_v42  ;;  %v109_v61 = vunpack.c.h.bf16 %v716_v47  ;;  %v31_v16 = vunpack.c.l.bf16 %v621_v8 }
   0xa   :  { %304 = vmatpush1.bf16.msra.mxu0 %v545_v4  ;;  %v58_v36 = vadd.f32 %v54_v25, %v47_v30  ;;  %v60_v37 = vadd.f32 %v56_v26, %v49_v31  ;;  %v550_v51 = vld [vmem:[%s905_s1 + $0x38] sm:$0xff]   ;;  %v745_v57 = vld [vmem:[%s906_s0 + $0xa0] sm:$0xff]  ;;  %521 = vmatpush3.bf16.msra.mxu1 %v555_v50  ;;  %v556_v58 = vld [vmem:[%s907_s2 + $0x8] sm:$0xff]   ;;  %v111_v62 = vunpack.c.h.bf16 %v721_v48  ;;  %v33_v19 = vunpack.c.l.bf16 %v628_v11 }
   0xb   :  { %305 = vmatprep.subr.bf16.mxu0 %v563_v0  ;;  %v740_v56 = vld [vmem:[%s906_s0 + $0x98] sm:$0xff]  ;;  %v755_v63 = vld [vmem:[%s906_s0 + $0xa8] sm:$0xff]  ;;  %522 = vmatprep.subr.bf16.mxu1 %v564_v2  ;;  %v762_v1 = vld [vmem:[%s906_s0 + $0xb0] sm:$0xff]  ;;  %v42_v8 = vunpack.c.l.bf16 %v633_v12  ;;  %v44_v11 = vunpack.c.l.bf16 %v638_v13  ;;  %v53_v12 = vunpack.c.l.bf16 %v648_v17  ;;  %v55_v13 = vunpack.c.l.bf16 %v653_v18 }
   0xc   :  { %v69_v43 = vadd.f32 %v65_v32, %v58_v36  ;;  %v71_v44 = vadd.f32 %v67_v33, %v60_v37  ;;  %v122_v9 = vunpack.c.h.bf16 %v740_v56  ;;  %v769_v10 = vld [vmem:[%s906_s0 + $0xb8] sm:$0xff]  ;;  %v557_v20 = vld [vmem:[%s907_s2 + $0x10] sm:$0xff]   ;;  %v551_v23 = vld [vmem:[%s905_s1 + $0x40] sm:$0xff]   ;;  %v133_v7 = vunpack.c.h.bf16 %v755_v63 }
   0xd   :  { %v790_v26 = vld [vmem:[%s906_s0 + $0xc0] sm:$0xff]  ;;  %v142_v32 = vunpack.c.h.bf16 %v762_v1  ;;  %v144_v33 = vunpack.c.h.bf16 %v769_v10  ;;  %v804_v36 = vld [vmem:[%s906_s0 + $0xd0] sm:$0xff]  ;;  %v809_v37 = vld [vmem:[%s906_s0 + $0xd8] sm:$0xff]  ;;  %v66_v50 = vunpack.c.l.bf16 %v666_v22  ;;  %v75_v22 = vunpack.c.l.bf16 %v673_v27 }
   0xe   :  { %306 = vmatpush1.bf16.msra.mxu0 %v546_v5  ;;  %v80_v52 = vadd.f32 %v76_v38, %v69_v43  ;;  %v82_v53 = vadd.f32 %v78_v39, %v71_v44  ;;  %v120_v5 = vunpack.c.h.bf16 %v727_v49  ;;  %523 = vmatpush3.bf16.msra.mxu1 %v556_v58  ;;  %v37_v39 = vadd.f32 %v33_v19, %v22_v15  ;;  %v552_v17 = vld [vmem:[%s905_s1 + $0x48] sm:$0xff]   ;;  %v553_v27 = vld [vmem:[%s905_s1 + $0x50] sm:$0xff]  }
   0xf   :  { %307 = vmatprep.subr.bf16.mxu0 %v563_v0  ;;  %524 = vmatprep.subr.bf16.mxu1 %v564_v2  ;;  %v153_v44 = vunpack.c.h.bf16 %v790_v26  ;;  %v88_v19 = vunpack.c.l.bf16 %v694_v35  ;;  %v554_v35 = vld [vmem:[%s905_s1 + $0x58] sm:$0xff]  }
  0x10   :  { %v91_v59 = vadd.f32 %v87_v45, %v80_v52  ;;  %v93_v60 = vadd.f32 %v89_v46, %v82_v53  ;;  %v64_v46 = vunpack.c.l.bf16 %v661_v21  ;;  %v831_v52 = vld [vmem:[%s906_s0 + $0xe8] sm:$0xff]  ;;  %v166_v21 = vunpack.c.h.bf16 %v809_v37 }
  0x11   :  { %v177_v15 = vunpack.c.h.bf16 %v831_v52 }
  0x12   :  { %308 = vmatpush1.bf16.msra.mxu0 %v547_v14  ;;  %v102_v3 = vadd.f32 %v98_v54, %v91_v59  ;;  %v104_v4 = vadd.f32 %v100_v55, %v93_v60  ;;  %v20_v14 = vunpack.c.l.bf16 %v611_v6  ;;  %v131_v6 = vunpack.c.h.bf16 %v745_v57  ;;  %525 = vmatpush3.bf16.msra.mxu1 %v557_v20 }
  0x13   :  { %309 = vmatprep.subr.bf16.mxu0 %v563_v0  ;;  %526 = vmatprep.subr.bf16.mxu1 %v564_v2  ;;  %v48_v54 = vadd.f32 %v44_v11, %v37_v39  ;;  %v164_v59 = vunpack.c.h.bf16 %v804_v36  ;;  %v77_v60 = vunpack.c.l.bf16 %v678_v28  ;;  %v99_v11 = vunpack.c.l.bf16 %v709_v42 }
  0x14   :  { %v113_v24 = vadd.f32 %v109_v61, %v102_v3  ;;  %v115_v25 = vadd.f32 %v111_v62, %v104_v4  ;;  %v35_v38 = vadd.f32 %v31_v16, %v20_v14  ;;  %v840_v61 = vld [vmem:[%s906_s0 + $0xf0] sm:$0xff]  ;;  %v845_v62 = vld [vmem:[%s906_s0 + $0xf8] sm:$0xff]  ;;  %v86_v16 = vunpack.c.l.bf16 %v689_v34  ;;  %v560_v34 = vld [vmem:[%s907_s2 + $0x28] sm:$0xff]  }
  0x15   :  { %v59_v4 = vadd.f32 %v55_v13, %v48_v54  ;;  %v110_v42 = vunpack.c.l.bf16 %v721_v48  ;;  %v130_v48 = vunpack.c.l.bf16 %v745_v57 }
  0x16   :  { %310 = vmatpush1.bf16.msra.mxu0 %v548_v29  ;;  %v795_v29 = vld [vmem:[%s906_s0 + $0xc8] sm:$0xff]  ;;  %v124_v30 = vadd.f32 %v120_v5, %v113_v24  ;;  %v126_v31 = vadd.f32 %v122_v9, %v115_v25  ;;  %v46_v53 = vadd.f32 %v42_v8, %v35_v38  ;;  %v559_v5 = vld [vmem:[%s907_s2 + $0x20] sm:$0xff]   ;;  %v97_v8 = vunpack.c.l.bf16 %v704_v41 }
  0x17   :  { %311 = vmatprep.subr.bf16.mxu0 %v563_v0  ;;  %v155_v45 = vunpack.c.h.bf16 %v795_v29  ;;  %v108_v41 = vunpack.c.l.bf16 %v716_v47 }
  0x18   :  { %v135_v18 = vadd.f32 %v131_v6, %v124_v30  ;;  %v137_v43 = vadd.f32 %v133_v7, %v126_v31  ;;  %v57_v3 = vadd.f32 %v53_v12, %v46_v53  ;;  %v186_v6 = vunpack.c.h.bf16 %v840_v61 }
  0x19   :  { %v188_v7 = vunpack.c.h.bf16 %v845_v62  ;;  %v143_v53 = vunpack.c.l.bf16 %v769_v10 }
  0x1a   :  { %312 = vmatpush1.bf16.msra.mxu0 %v549_v40  ;;  %v558_v40 = vld [vmem:[%s907_s2 + $0x18] sm:$0xff]   ;;  %v146_v55 = vadd.f32 %v142_v32, %v135_v18  ;;  %v148_v58 = vadd.f32 %v144_v33, %v137_v43  ;;  %v68_v20 = vadd.f32 %v64_v46, %v57_v3  ;;  %v176_v3 = vunpack.c.l.bf16 %v831_v52 }
  0x1b   :  { %313 = vmatprep.subr.bf16.mxu0 %v563_v0  ;;  %527 = vmatpush3.bf16.msra.mxu1 %v558_v40  ;;  %v119_v40 = vunpack.c.l.bf16 %v727_v49 }
  0x1c   :  { %v157_v28 = vadd.f32 %v153_v44, %v146_v55  ;;  %v159_v9 = vadd.f32 %v155_v45, %v148_v58  ;;  %528 = vmatprep.subr.bf16.mxu1 %v564_v2  ;;  %v79_v30 = vadd.f32 %v75_v22, %v68_v20  ;;  %v561_v44 = vld [vmem:[%s907_s2 + $0x30] sm:$0xff]   ;;  %v132_v45 = vunpack.c.l.bf16 %v755_v63 }
  0x1d   :  { %v152_v58 = vunpack.c.l.bf16 %v790_v26  ;;  %v163_v63 = vunpack.c.l.bf16 %v804_v36  ;;  %v165_v22 = vunpack.c.l.bf16 %v809_v37  ;;  %v187_v26 = vunpack.c.l.bf16 %v845_v62 }
  0x1e   :  { %314 = vmatpush1.bf16.msra.mxu0 %v550_v51  ;;  %v826_v51 = vld [vmem:[%s906_s0 + $0xe0] sm:$0xff]  ;;  %v168_v24 = vadd.f32 %v164_v59, %v157_v28  ;;  %v170_v25 = vadd.f32 %v166_v21, %v159_v9  ;;  %v90_v12 = vadd.f32 %v86_v16, %v79_v30  ;;  %v154_v59 = vunpack.c.l.bf16 %v795_v29 }
  0x1f   :  { %315 = vmatprep.subr.bf16.mxu0 %v563_v0  ;;  %v175_v14 = vunpack.c.h.bf16 %v826_v51  ;;  %529 = vmatpush3.bf16.msra.mxu1 %v559_v5  ;;  %v174_v10 = vunpack.c.l.bf16 %v826_v51  ;;  %v562_v51 = vld [vmem:[%s907_s2 + $0x38] sm:$0xff]  }
  0x20   :  { %v181_v33 = vadd.f32 %v177_v15, %v170_v25  ;;  %530 = vmatprep.subr.bf16.mxu1 %v564_v2  ;;  %v101_v18 = vadd.f32 %v97_v8, %v90_v12 }
  0x21   :  { %v179_v32 = vadd.f32 %v175_v14, %v168_v24  ;;  %v502_v24 = vld [vmem:[%s908_s3] ss:$0 sm:$0xff] }
  0x22   :  { %316 = vmatpush1.bf16.msra.mxu0 %v551_v23  ;;  %v70_v23 = vadd.f32 %v66_v50, %v59_v4  ;;  %v192_v39 = vadd.f32 %v188_v7, %v181_v33  ;;  %v112_v49 = vadd.f32 %v108_v41, %v101_v18  ;;  %v141_v50 = vunpack.c.l.bf16 %v762_v1 }
  0x23   :  { %317 = vmatprep.subr.bf16.mxu0 %v563_v0  ;;  %v190_v38 = vadd.f32 %v186_v6, %v179_v32  ;;  %531 = vmatpush3.bf16.msra.mxu1 %v560_v34 }
  0x24   :  { %v81_v31 = vadd.f32 %v77_v60, %v70_v23  ;;  %v196_v47 = vmul.f32 0.0625, %v192_v39  ;;  %532 = vmatprep.subr.bf16.mxu1 %v564_v2  ;;  %v123_v54 = vadd.f32 %v119_v40, %v112_v49 }
  0x26   :  { %318 = vmatpush1.bf16.msra.mxu0 %v552_v17  ;;  %v92_v13 = vadd.f32 %v88_v19, %v81_v31  ;;  %v121_v17 = vunpack.c.l.bf16 %v740_v56  ;;  %v134_v57 = vadd.f32 %v130_v48, %v123_v54 }
  0x27   :  { %319 = vmatprep.subr.bf16.mxu0 %v563_v0  ;;  %533 = vmatpush3.bf16.msra.mxu1 %v561_v44 }
  0x28   :  { %v103_v43 = vadd.f32 %v99_v11, %v92_v13  ;;  %534 = vmatprep.subr.bf16.mxu1 %v564_v2  ;;  %v145_v60 = vadd.f32 %v141_v50, %v134_v57 }
  0x2a   :  { %320 = vmatpush1.bf16.msra.mxu0 %v553_v27  ;;  %v114_v46 = vadd.f32 %v110_v42, %v103_v43  ;;  %v156_v4 = vadd.f32 %v152_v58, %v145_v60  ;;  %v185_v27 = vunpack.c.l.bf16 %v840_v61 }
  0x2b   :  { %321 = vmatprep.subr.bf16.mxu0 %v563_v0  ;;  %v194_v0 = vmul.f32 0.0625, %v190_v38  ;;  %535 = vmatpush3.bf16.msra.mxu1 %v562_v51 }
  0x2c   :  { %v125_v55 = vadd.f32 %v121_v17, %v114_v46  ;;  %v167_v28 = vadd.f32 %v163_v63, %v156_v4 }
  0x2d   :  { %v198_v56 = vpack.c.bf16 %v196_v47, %v194_v0 }
  0x2e   :  { %322 = vmatpush1.bf16.msra.mxu0 %v554_v35  ;;  %v136_v21 = vadd.f32 %v132_v45, %v125_v55  ;;  %v178_v9 = vadd.f32 %v174_v10, %v167_v28 }
  0x2f   :  { %501 = vmatprep.mubr.msk.bf16.mxu0 %vm295_vm0, %v198_v56 }
  0x30   :  { %v147_v1 = vadd.f32 %v143_v53, %v136_v21  ;;  %v189_v15 = vadd.f32 %v185_v27, %v178_v9 }
  0x32   :  { %v158_v5 = vadd.f32 %v154_v59, %v147_v1  ;;  %v193_v16 = vmul.f32 0.0625, %v189_v15 }
  0x34   :  { %v169_v29 = vadd.f32 %v165_v22, %v158_v5 }
  0x36   :  { %v180_v14 = vadd.f32 %v176_v3, %v169_v29 }
  0x38   :  { %v191_v36 = vadd.f32 %v187_v26, %v180_v14 }
  0x3a   :  { %v195_v37 = vmul.f32 0.0625, %v191_v36 }
  0x3c   :  { %v197_v19 = vpack.c.bf16 %v195_v37, %v193_v16 }
  0x3e   :  { %332 = vmatmul.mubr.bf16.vlgmr.msra.gmra.mrb[0].mxu0 %v197_v19 }
 0x111   :  { %v333_v52 = vpop.f32.mrb[0].mxu0 }
 0x112   :  { %v335_v61 = vpop.f32.mrb[1].mxu0 }
 0x113   :  { %v336_v62 = vpop.f32.mrb[2].mxu0 }
 0x114   :  { %v340_v20 = vpack.c.bf16 %v336_v62, %v333_v52  ;;  %v338_v23 = vpop.f32.mrb[3].mxu0 }
 0x116   :  { %537 = vmatmul.mubr.bf16.vlgmr.msra.gmra.mrb[0].mxu1 %v340_v20 }
 0x1e9   :  { %v446_v25 = vpop.f32.mrb[0].mxu1 }
 0x1ea   :  { %v447_v6 = vadd.f32 %v502_v24, %v446_v25  ;;  %v538_v7 = vpop.f32.mrb[1].mxu1 }
 0x1eb   :  { %v449_v8 = vpop.f32.mrb[2].mxu1 }
 0x1ec   :  { %453 = vst [vmem:[%s909_s4] sm:$0xff] %v447_v6  ;;  %v450_v11 = vadd.f32 %v502_v24, %v449_v8  ;;  %v539_v2 = vpop.f32.mrb[3].mxu1 }
 0x1ee   :  { %454 = vst [vmem:[%s909_s4 + $0x8] sm:$0xff] %v450_v11 }

</bundles_post_ra>
